<compile_context>
chip_gen: v7x
topology: tpu7x:2x2x1
jax: 0.10.0
libtpu: 0.0.40
codegen_flags: <defaults>
</compile_context>

<pallas_src>
import jax
import jax.numpy as jnp
from jax.experimental import pallas as pl
from jax.experimental.pallas import tpu as pltpu


def _gnnp_kernel(x_ref, adj_ref, w1_ref, w2_ref, out_ref):
    adj = adj_ref[...]            # [N, N]  (f32 or bf16)
    x = x_ref[0]                  # [N, P]  f32, zero-padded past C
    mxu_dt = adj.dtype            # dtype used for the two O(N^2) adj matmuls

    # layer 1 (reassociated): relu((adj @ x) @ W1)
    s = jnp.dot(adj, x.astype(mxu_dt), preferred_element_type=jnp.float32)          # [N, P]
    h = jnp.maximum(jnp.dot(s, w1_ref[...], preferred_element_type=jnp.float32), 0.0)

    # layer 2: adj @ (h @ W2)   (H >= C, so contracting H first is already optimal)
    t = jnp.dot(h, w2_ref[...], preferred_element_type=jnp.float32)                 # [N, P]
    o = jnp.dot(adj, t.astype(mxu_dt), preferred_element_type=jnp.float32)          # [N, P]

    out_ref[0] = o.astype(out_ref.dtype)


def _pad2d(a, rows, cols):
    r, c = a.shape
    return jnp.pad(a, ((0, rows - r), (0, cols - c)))


def gnnp_forward(x, adj, w1, w2, *, adj_dtype=None):
    """Fused GNNp forward pass (eval mode).

    x   : [N, C] or [B, N, C]
    adj : [N, N] dense normalized adjacency
    w1  : [C, H], w2 : [H, C]
    adj_dtype: optional dtype (e.g. jnp.bfloat16) for the two O(N^2) adjacency
               matmuls; accumulation stays f32.
    """
    squeeze_batch = (x.ndim == 2)
    if squeeze_batch:
        x = x[None]
    b, n, c = x.shape
    h = w1.shape[1]
    assert adj.shape == (n, n) and w1.shape == (c, h) and w2.shape == (h, c)

    # lane-dense padded width for all feature dims (C, H -> multiple of 128)
    p = 128 * pl.cdiv(max(c, h), 128)

    x_p = jnp.pad(x, ((0, 0), (0, 0), (0, p - c)))
    w1_p = _pad2d(w1, p, p)                    # live region [:c, :h], rest zero
    w2_p = _pad2d(w2, p, p)                    # live region [:h, :c], rest zero
    adj_p = adj if adj_dtype is None else adj.astype(adj_dtype)

    out = pl.pallas_call(
        _gnnp_kernel,
        out_shape=jax.ShapeDtypeStruct((b, n, p), x.dtype),
        grid=(b,),
        in_specs=[
            pl.BlockSpec((1, n, p), lambda i: (i, 0, 0)),   # x  (per-graph block)
            pl.BlockSpec((n, n), lambda i: (0, 0)),         # adj (shared)
            pl.BlockSpec((p, p), lambda i: (0, 0)),         # W1 (shared)
            pl.BlockSpec((p, p), lambda i: (0, 0)),         # W2 (shared)
        ],
        out_specs=pl.BlockSpec((1, n, p), lambda i: (i, 0, 0)),
        compiler_params=pltpu.CompilerParams(
            dimension_semantics=("parallel",)),
    )(x_p, adj_p, w1_p, w2_p)

    out = out[:, :, :c]
    return out[0] if squeeze_batch else out


def _init_weight(key, fan_in, fan_out):
    # GraphConvolution.reset_parameters(): uniform(-stdv, stdv), stdv = 1/sqrt(out)
    stdv = 1.0 / (fan_out ** 0.5)
    return jax.random.uniform(
        key, (fan_in, fan_out), minval=-stdv, maxval=stdv, dtype=jnp.float32
    )


def _make_normalized_adj(key, n):
    # Deterministic synthetic symmetric adjacency with self-loops, row-normalized.
    a = (jax.random.uniform(key, (n, n)) > 0.85).astype(jnp.float32)
    a = jnp.maximum(a, a.T) + jnp.eye(n, dtype=jnp.float32)
    deg = jnp.sum(a, axis=1, keepdims=True)
    return a / deg


def _ref(x, adj, w1, w2):
    # PyTorch-order reference (eval-mode dropout == identity)
    h = jnp.maximum(adj @ (x @ w1), 0.0)
    return adj @ (h @ w2)


if __name__ == "__main__":
    # opt: num_class=8, hidden_dim=32, N=64 nodes, (optional) batch of 2 graphs
    N, NUM_CLASS, HIDDEN, B = 64, 8, 32, 2

    key = jax.random.PRNGKey(0)
    k_x, k_adj, k_w1, k_w2 = jax.random.split(key, 4)

    xb = jax.random.uniform(k_x, (B, N, NUM_CLASS), dtype=jnp.float32)  # soft labels
    adj = _make_normalized_adj(k_adj, N)
    w1 = _init_weight(k_w1, NUM_CLASS, HIDDEN)
    w2 = _init_weight(k_w2, HIDDEN, NUM_CLASS)

    # single-graph forward (module semantics), full f32
    out = jax.block_until_ready(gnnp_forward(xb[0], adj, w1, w2))
    ref = _ref(xb[0], adj, w1, w2)
    assert out.shape == (N, NUM_CLASS)
    assert jnp.allclose(out, ref, atol=1e-4, rtol=1e-4)

    # batched forward over the parallel grid axis
    out_b = jax.block_until_ready(gnnp_forward(xb, adj, w1, w2))
    ref_b = jnp.stack([_ref(xb[i], adj, w1, w2) for i in range(B)])
    assert out_b.shape == (B, N, NUM_CLASS)
    assert jnp.allclose(out_b, ref_b, atol=1e-4, rtol=1e-4)

    # bf16-adjacency fast path (f32 accumulation): looser tolerance vs f32 reference
    out_bf = jax.block_until_ready(
        gnnp_forward(xb[0], adj, w1, w2, adj_dtype=jnp.bfloat16))
    assert jnp.allclose(out_bf, ref, atol=2e-2, rtol=2e-2)

    print("KERNEL_OK")
</pallas_src>

<mosaic_0001>
module attributes {stable_mosaic.version = 11 : i64} {
  func.func @_gnnp_kernel(%arg0: i32, %arg1: memref<1x64x128xf32, #tpu.memory_space<vmem>>, %arg2: memref<64x64xf32, #tpu.memory_space<vmem>>, %arg3: memref<128x128xf32, #tpu.memory_space<vmem>>, %arg4: memref<128x128xf32, #tpu.memory_space<vmem>>, %arg5: memref<1x64x128xf32, #tpu.memory_space<vmem>>) attributes {dimension_semantics = [#tpu.dimension_semantics<parallel>], iteration_bounds = array<i64: 1>, scalar_prefetch = 0 : i64, scratch_operands = 0 : i64, tpu.core_type = #tpu.core_type<tc>, window_params = [{transform_indices = @transform_0, window_bounds = array<i64: 1, 64, 128>}, {pipeline_mode = #tpu.pipeline_mode<synchronous>, transform_indices = @transform_1, window_bounds = array<i64: 64, 64>}, {pipeline_mode = #tpu.pipeline_mode<synchronous>, transform_indices = @transform_2, window_bounds = array<i64: 128, 128>}, {pipeline_mode = #tpu.pipeline_mode<synchronous>, transform_indices = @transform_3, window_bounds = array<i64: 128, 128>}, {transform_indices = @transform_4, window_bounds = array<i64: 1, 64, 128>}]} {
    %c0 = arith.constant 0 : index
    %c0_0 = arith.constant 0 : index
    %0 = vector.load %arg2[%c0, %c0_0] : memref<64x64xf32, #tpu.memory_space<vmem>>, vector<64x64xf32>
    %c0_1 = arith.constant 0 : index
    %c0_2 = arith.constant 0 : index
    %c0_3 = arith.constant 0 : index
    %1 = vector.load %arg1[%c0_1, %c0_2, %c0_3] : memref<1x64x128xf32, #tpu.memory_space<vmem>>, vector<1x64x128xf32>
    %2 = vector.shape_cast %1 : vector<1x64x128xf32> to vector<64x128xf32>
    %cst = arith.constant dense<0.000000e+00> : vector<64x128xf32>
    %3 = tpu.matmul %0, %2, %cst {dimension_numbers = #tpu.dot_dimension_numbers<[1], [0], [0], [1], [0, 0, 1, 1], [], []>} : vector<64x64xf32>, vector<64x128xf32>, vector<64x128xf32> -> vector<64x128xf32>
    %c0_4 = arith.constant 0 : index
    %c0_5 = arith.constant 0 : index
    %4 = vector.load %arg3[%c0_4, %c0_5] : memref<128x128xf32, #tpu.memory_space<vmem>>, vector<128x128xf32>
    %cst_6 = arith.constant dense<0.000000e+00> : vector<64x128xf32>
    %5 = tpu.matmul %3, %4, %cst_6 {dimension_numbers = #tpu.dot_dimension_numbers<[1], [0], [0], [1], [0, 0, 1, 1], [], []>} : vector<64x128xf32>, vector<128x128xf32>, vector<64x128xf32> -> vector<64x128xf32>
    %cst_7 = arith.constant 0.000000e+00 : f32
    %6 = vector.broadcast %cst_7 : f32 to vector<64x128xf32>
    %7 = arith.maximumf %5, %6 : vector<64x128xf32>
    %c0_8 = arith.constant 0 : index
    %c0_9 = arith.constant 0 : index
    %8 = vector.load %arg4[%c0_8, %c0_9] : memref<128x128xf32, #tpu.memory_space<vmem>>, vector<128x128xf32>
    %cst_10 = arith.constant dense<0.000000e+00> : vector<64x128xf32>
    %9 = tpu.matmul %7, %8, %cst_10 {dimension_numbers = #tpu.dot_dimension_numbers<[1], [0], [0], [1], [0, 0, 1, 1], [], []>} : vector<64x128xf32>, vector<128x128xf32>, vector<64x128xf32> -> vector<64x128xf32>
    %cst_11 = arith.constant dense<0.000000e+00> : vector<64x128xf32>
    %10 = tpu.matmul %0, %9, %cst_11 {dimension_numbers = #tpu.dot_dimension_numbers<[1], [0], [0], [1], [0, 0, 1, 1], [], []>} : vector<64x64xf32>, vector<64x128xf32>, vector<64x128xf32> -> vector<64x128xf32>
    %c0_12 = arith.constant 0 : index
    %c0_13 = arith.constant 0 : index
    %c0_14 = arith.constant 0 : index
    %11 = vector.load %arg5[%c0_12, %c0_13, %c0_14] : memref<1x64x128xf32, #tpu.memory_space<vmem>>, vector<1x64x128xf32>
    %12 = vector.shape_cast %11 : vector<1x64x128xf32> to vector<64x128xf32>
    %13 = vector.shape_cast %10 : vector<64x128xf32> to vector<1x64x128xf32>
    tpu.vector_store %arg5[%c0_12, %c0_13, %c0_14], %13 {strides = array<i32>} : memref<1x64x128xf32, #tpu.memory_space<vmem>>, vector<1x64x128xf32>,
    return
  }
  func.func @transform_0(%arg0: i32) -> (i32, i32, i32) {
    %c0_i32 = arith.constant 0 : i32
    %c0_i32_0 = arith.constant 0 : i32
    %c0_i32_1 = arith.constant 0 : i32
    return %arg0, %c0_i32, %c0_i32_0 : i32, i32, i32
  }
  func.func @transform_1(%arg0: i32) -> (i32, i32) {
    %c0_i32 = arith.constant 0 : i32
    %c0_i32_0 = arith.constant 0 : i32
    %c0_i32_1 = arith.constant 0 : i32
    return %c0_i32, %c0_i32_0 : i32, i32
  }
  func.func @transform_2(%arg0: i32) -> (i32, i32) {
    %c0_i32 = arith.constant 0 : i32
    %c0_i32_0 = arith.constant 0 : i32
    %c0_i32_1 = arith.constant 0 : i32
    return %c0_i32, %c0_i32_0 : i32, i32
  }
  func.func @transform_3(%arg0: i32) -> (i32, i32) {
    %c0_i32 = arith.constant 0 : i32
    %c0_i32_0 = arith.constant 0 : i32
    %c0_i32_1 = arith.constant 0 : i32
    return %c0_i32, %c0_i32_0 : i32, i32
  }
  func.func @transform_4(%arg0: i32) -> (i32, i32, i32) {
    %c0_i32 = arith.constant 0 : i32
    %c0_i32_0 = arith.constant 0 : i32
    %c0_i32_1 = arith.constant 0 : i32
    return %arg0, %c0_i32, %c0_i32_0 : i32, i32, i32
  }
}

</mosaic_0001>

<bundles_post_ra>
// kernel: tpu_custom_call.1
= control target key start
LH: loop header
LB: loop body
LE: loop exit
PB: predicated region body
PF: predicated region fallthrough
CT: control target
= control target key end

     0   :  { %9 = vsyncpa [#allocation3], 0  ;;  %s1231_s0 = inlined_call_operand.hbm [shape: f32[1,64,128], index: 0, kind: input, shape index: {}]   ;;  %s1232_s1 = inlined_call_operand.hbm [shape: f32[64,64], index: 1, kind: input, shape index: {}]   ;;  %s1233_s2 = inlined_call_operand.hbm [shape: f32[128,128], index: 2, kind: input, shape index: {}]   ;;  %s1234_s3 = inlined_call_operand.hbm [shape: f32[128,128], index: 3, kind: input, shape index: {}]   ;;  %s1235_s4 = inlined_call_operand.hbm [shape: f32[1,64,128], index: 4, kind: output, shape index: {}]  }
   0x1   :  { %10 = vsyncpa [#allocation6], 0 }
   0x2   :  { %11 = vsyncpa [#allocation9], 0 }
   0x3   :  { %12 = vsyncpa [#allocation4], 0  ;;  %s1062_s15 = smov [#allocation5]   ;;  %s1063_s17 = smov [#allocation2]  }
   0x4   :  { %s30_s16 = sshll.u32 %s1062_s15, 4  ;;  %s18_s18 = sshll.u32 %s1063_s17, 4  ;;  %s31_s16 = int_to_ptr.vmem [resolvable:$true] %s30_s16  ;;  %s1094_s18 = int_to_ptr.vmem [resolvable:$true] %s18_s18 }
   0x5   :  { %s944_s21 = scalar_lea.hbm %s1232_s1, 1024 }
   0x6   :  { %p945_p0 = scmp.ne.s32.totalorder %s1232_s1, %s944_s21  ;;  %p948_p1 = scmp.lt.u32.totalorder %s944_s21, %s1232_s1 }
   0x8   :  { %p950_p2 = pnand %p948_p1, %p945_p0 }
   0xa   :  { %953 = shalt.err (!%p950_p2)
}
   0xb   :  { %s954_s26 = scalar_lea.vmem %s31_s16, 1024  ;;  %p959_p4 = scmp.lt.s32.totalorder %s31_s16, %s31_s16 }
   0xc   :  { %p955_p3 = scmp.ne.s32.totalorder %s31_s16, %s954_s26  ;;  %p960_p5 = scmp.lt.s32.totalorder %s954_s26, %s954_s26 }
   0xe   :  { %p961_p6 = por %p960_p5, %p959_p4 }
  0x10   :  { %p962_p7 = pnand %p961_p6, %p955_p3 }
  0x12   :  { %965 = shalt.err (!%p962_p7)
}
  0x13   :  { %s1064_s27 = smov 128   ;;  %s1065_s28 = smov 8  }
  0x14   :  { %36 = dma.hbm_to_vmem [thread:$0]  %s1232_s1, 1024, %s31_s16, [#allocation6], %s1064_s27, %s1064_s27, %s1065_s28  }
  0x15   :  { %s966_s7 = scalar_lea.hbm %s1231_s0, 1024 }
  0x16   :  { %p967_p8 = scmp.ne.s32.totalorder %s1231_s0, %s966_s7  ;;  %p970_p9 = scmp.lt.u32.totalorder %s966_s7, %s1231_s0 }
  0x18   :  { %p972_p10 = pnand %p970_p9, %p967_p8 }
  0x1a   :  { %975 = shalt.err (!%p972_p10)
}
  0x1b   :  { %s976_s12 = scalar_lea.vmem %s1094_s18, 1024  ;;  %p981_p12 = scmp.lt.s32.totalorder %s1094_s18, %s1094_s18 }
  0x1c   :  { %p977_p11 = scmp.ne.s32.totalorder %s1094_s18, %s976_s12  ;;  %p982_p13 = scmp.lt.s32.totalorder %s976_s12, %s976_s12 }
  0x1e   :  { %p983_p0 = por %p982_p13, %p981_p12 }
  0x20   :  { %p984_p1 = pnand %p983_p0, %p977_p11 }
  0x22   :  { %987 = shalt.err (!%p984_p1)
}
  0x23   :  { %24 = dma.hbm_to_vmem [thread:$0]  %s1231_s0, 1024, %s1094_s18, [#allocation3], %s1064_s27, %s1064_s27, %s1065_s28  }
  0x24   :  { %s1066_s14 = smov [#allocation7]   ;;  %s1067_s16 = smov [#allocation8]  }
  0x25   :  { %s42_s15 = sshll.u32 %s1066_s14, 4  ;;  %s54_s17 = sshll.u32 %s1067_s16, 4  ;;  %s43_s15 = int_to_ptr.vmem [resolvable:$true] %s42_s15  ;;  %s1131_s17 = int_to_ptr.vmem [resolvable:$true] %s54_s17 }
  0x26   :  { %s988_s21 = scalar_lea.hbm %s1233_s2, 2048 }
  0x27   :  { %p989_p2 = scmp.ne.s32.totalorder %s1233_s2, %s988_s21  ;;  %p992_p3 = scmp.lt.u32.totalorder %s988_s21, %s1233_s2 }
  0x29   :  { %p994_p4 = pnand %p992_p3, %p989_p2 }
  0x2b   :  { %997 = shalt.err (!%p994_p4)
}
  0x2c   :  { %s998_s0 = scalar_lea.vmem %s43_s15, 2048  ;;  %p1003_p6 = scmp.lt.s32.totalorder %s43_s15, %s43_s15 }
  0x2d   :  { %p999_p5 = scmp.ne.s32.totalorder %s43_s15, %s998_s0  ;;  %p1004_p7 = scmp.lt.s32.totalorder %s998_s0, %s998_s0 }
  0x2f   :  { %p1005_p8 = por %p1004_p7, %p1003_p6 }
  0x31   :  { %p1006_p9 = pnand %p1005_p8, %p999_p5 }
  0x33   :  { %1009 = shalt.err (!%p1006_p9)
}
  0x34   :  { %48 = dma.hbm_to_vmem [thread:$0]  %s1233_s2, 2048, %s43_s15, [#allocation6], %s1064_s27, %s1064_s27, %s1065_s28  }
  0x35   :  { %s1010_s5 = scalar_lea.hbm %s1234_s3, 2048 }
  0x36   :  { %p1011_p10 = scmp.ne.s32.totalorder %s1234_s3, %s1010_s5  ;;  %p1014_p11 = scmp.lt.u32.totalorder %s1010_s5, %s1234_s3 }
  0x38   :  { %p1016_p12 = pnand %p1014_p11, %p1011_p10 }
  0x3a   :  { %1019 = shalt.err (!%p1016_p12)
}
  0x3b   :  { %s1020_s10 = scalar_lea.vmem %s1131_s17, 2048  ;;  %p1025_p0 = scmp.lt.s32.totalorder %s1131_s17, %s1131_s17 }
  0x3c   :  { %p1021_p13 = scmp.ne.s32.totalorder %s1131_s17, %s1020_s10  ;;  %p1026_p1 = scmp.lt.s32.totalorder %s1020_s10, %s1020_s10 }
  0x3e   :  { %p1027_p2 = por %p1026_p1, %p1025_p0 }
  0x40   :  { %p1028_p3 = pnand %p1027_p2, %p1021_p13 }
  0x42   :  { %1031 = shalt.err (!%p1028_p3)
}
  0x43   :  { %60 = dma.hbm_to_vmem [thread:$0]  %s1234_s3, 2048, %s1131_s17, [#allocation9], %s1064_s27, %s1064_s27, %s1065_s28  }
  0x44   :  { %1054 = dma.done.wait [#allocation3], 1024  }
  0x45   :  { %1055 = vsyncadd [#allocation3], 4294966272 }
  0x46   :  { %1056 = dma.done.wait [#allocation6], 3072  }
  0x47   :  { %1057 = vsyncadd [#allocation6], 4294964224 }
  0x48   :  { %1058 = dma.done.wait [#allocation9], 2048  }
  0x49   :  { %1059 = vsyncadd [#allocation9], 4294965248  ;;  %v81_v0 = vld [vmem:[#allocation2] sm:$0xff]  ;;  %v82_v1 = vld [vmem:[#allocation2 + $0x8] sm:$0xff]  ;;  %vm89_vm0 = vcmask 523264   ;;  %s1068_s3 = smov [#allocation10]  }
  0x4a   :  { %v83_v2 = vld [vmem:[#allocation2 + $0x10] sm:$0xff]  ;;  %v841_v3 = vpack.c.bf16 %v82_v1, %v81_v0  ;;  %v84_v4 = vld [vmem:[#allocation2 + $0x18] sm:$0xff]  ;;  %v85_v6 = vld [vmem:[#allocation2 + $0x20] sm:$0xff]  ;;  %s587_s12 = sshll.u32 %s1068_s3, 4  ;;  %s588_s12 = int_to_ptr.vmem [resolvable:$true] %s587_s12 }
  0x4b   :  { %v845_v5 = vpack.c.bf16 %v84_v4, %v83_v2  ;;  %v86_v7 = vld [vmem:[#allocation2 + $0x28] sm:$0xff]  ;;  %v1168_v8 = vld [vmem:[#allocation5] sm:$0xff]  ;;  %v87_v10 = vld [vmem:[#allocation2 + $0x30] sm:$0xff]  ;;  %s1032_s1 = scalar_lea.vmem %s588_s12, 1024  ;;  %p1037_p5 = scmp.lt.s32.totalorder %s588_s12, %s588_s12 }
  0x4c   :  { %842 = vmatprep.subr.bf16.mxu0 %v841_v3  ;;  %713 = vmatprep.mubr.msk.f32.mxu0 %vm89_vm0, %v1168_v8  ;;  %v849_v9 = vpack.c.bf16 %v86_v7, %v85_v6  ;;  %v219_v11 = vld [vmem:[#allocation7] sm:$0xff]  ;;  %v220_v12 = vld [vmem:[#allocation7 + $0x8] sm:$0xff]  ;;  %v88_v13 = vld [vmem:[#allocation2 + $0x38] sm:$0xff]  ;;  %p1033_p4 = scmp.ne.s32.totalorder %s588_s12, %s1032_s1  ;;  %p1038_p6 = scmp.lt.s32.totalorder %s1032_s1, %s1032_s1 }
  0x4d   :  { %844 = vmatpush3.bf16.msra.mxu0 %v841_v3  ;;  %v857_v14 = vpack.c.bf16 %v220_v12, %v219_v11  ;;  %v221_v15 = vld [vmem:[#allocation7 + $0x10] sm:$0xff]  ;;  %v222_v16 = vld [vmem:[#allocation7 + $0x18] sm:$0xff]  ;;  %v223_v18 = vld [vmem:[#allocation7 + $0x20] sm:$0xff]  ;;  %v853_v20 = vpack.c.bf16 %v88_v13, %v87_v10 }
  0x4e   :  { %846 = vmatprep.subr.bf16.mxu0 %v845_v5  ;;  %v861_v17 = vpack.c.bf16 %v222_v16, %v221_v15  ;;  %v224_v19 = vld [vmem:[#allocation7 + $0x28] sm:$0xff]  ;;  %v225_v22 = vld [vmem:[#allocation7 + $0x30] sm:$0xff]  ;;  %v226_v23 = vld [vmem:[#allocation7 + $0x38] sm:$0xff]  ;;  %p1039_p7 = por %p1038_p6, %p1037_p5 }
  0x4f   :  { %858 = vmatprep.subr.bf16.mxu1 %v857_v14  ;;  %v865_v21 = vpack.c.bf16 %v224_v19, %v223_v18  ;;  %v869_v24 = vpack.c.bf16 %v226_v23, %v225_v22  ;;  %v227_v25 = vld [vmem:[#allocation7 + $0x40] sm:$0xff]  ;;  %v228_v26 = vld [vmem:[#allocation7 + $0x48] sm:$0xff]  ;;  %v1174_v28 = vld [vmem:[#allocation5 + $0x10] sm:$0xff] }
  0x50   :  { %860 = vmatpush3.bf16.msra.mxu1 %v857_v14  ;;  %v1172_v27 = vld [vmem:[#allocation5 + $0x8] sm:$0xff]  ;;  %v873_v29 = vpack.c.bf16 %v228_v26, %v227_v25  ;;  %v229_v30 = vld [vmem:[#allocation7 + $0x50] sm:$0xff]  ;;  %v230_v31 = vld [vmem:[#allocation7 + $0x58] sm:$0xff]  ;;  %p1040_p8 = pnand %p1039_p7, %p1033_p4 }
  0x51   :  { %848 = vmatpush3.bf16.msra.mxu0 %v845_v5  ;;  %862 = vmatprep.subr.bf16.mxu1 %v861_v17  ;;  %v1180_v32 = vld [vmem:[#allocation5 + $0x18] sm:$0xff]  ;;  %v1182_v33 = vld [vmem:[#allocation5 + $0x20] sm:$0xff]  ;;  %v877_v34 = vpack.c.bf16 %v230_v31, %v229_v30  ;;  %v232_v36 = vld [vmem:[#allocation7 + $0x68] sm:$0xff] }
  0x52   :  { %850 = vmatprep.subr.bf16.mxu0 %v849_v9  ;;  %v231_v35 = vld [vmem:[#allocation7 + $0x60] sm:$0xff]  ;;  %v1188_v37 = vld [vmem:[#allocation5 + $0x28] sm:$0xff]  ;;  %v1190_v38 = vld [vmem:[#allocation5 + $0x30] sm:$0xff] }
  0x53   :  { %v881_v39 = vpack.c.bf16 %v232_v36, %v231_v35  ;;  %v233_v40 = vld [vmem:[#allocation7 + $0x70] sm:$0xff]  ;;  %v234_v41 = vld [vmem:[#allocation7 + $0x78] sm:$0xff]  ;;  %v348_v44 = vld [vmem:[#allocation8] sm:$0xff] }
  0x54   :  { %864 = vmatpush3.bf16.msra.mxu1 %v861_v17  ;;  %v1196_v42 = vld [vmem:[#allocation5 + $0x38] sm:$0xff]  ;;  %v885_v43 = vpack.c.bf16 %v234_v41, %v233_v40  ;;  %v349_v45 = vld [vmem:[#allocation8 + $0x8] sm:$0xff]  ;;  %v350_v46 = vld [vmem:[#allocation8 + $0x10] sm:$0xff] }
  0x55   :  { %852 = vmatpush3.bf16.msra.mxu0 %v849_v9  ;;  %866 = vmatprep.subr.bf16.mxu1 %v865_v21  ;;  %v889_v47 = vpack.c.bf16 %v349_v45, %v348_v44  ;;  %v351_v48 = vld [vmem:[#allocation8 + $0x18] sm:$0xff]  ;;  %v352_v50 = vld [vmem:[#allocation8 + $0x20] sm:$0xff]  ;;  %v353_v51 = vld [vmem:[#allocation8 + $0x28] sm:$0xff] }
  0x56   :  { %854 = vmatprep.subr.bf16.mxu0 %v853_v20  ;;  %v893_v49 = vpack.c.bf16 %v351_v48, %v350_v46  ;;  %v897_v52 = vpack.c.bf16 %v353_v51, %v352_v50  ;;  %v354_v53 = vld [vmem:[#allocation8 + $0x30] sm:$0xff]  ;;  %v355_v54 = vld [vmem:[#allocation8 + $0x38] sm:$0xff]  ;;  %v356_v56 = vld [vmem:[#allocation8 + $0x40] sm:$0xff] }
  0x57   :  { %v901_v55 = vpack.c.bf16 %v355_v54, %v354_v53  ;;  %v357_v57 = vld [vmem:[#allocation8 + $0x48] sm:$0xff]  ;;  %v358_v59 = vld [vmem:[#allocation8 + $0x50] sm:$0xff]  ;;  %v359_v60 = vld [vmem:[#allocation8 + $0x58] sm:$0xff] }
  0x58   :  { %868 = vmatpush3.bf16.msra.mxu1 %v865_v21  ;;  %v905_v58 = vpack.c.bf16 %v357_v57, %v356_v56  ;;  %v909_v61 = vpack.c.bf16 %v359_v60, %v358_v59  ;;  %v360_v62 = vld [vmem:[#allocation8 + $0x60] sm:$0xff]  ;;  %v361_v63 = vld [vmem:[#allocation8 + $0x68] sm:$0xff]  ;;  %v362_v10 = vld [vmem:[#allocation8 + $0x70] sm:$0xff] }
  0x59   :  { %856 = vmatpush3.bf16.msra.mxu0 %v853_v20  ;;  %870 = vmatprep.subr.bf16.mxu1 %v869_v24  ;;  %v913_v0 = vpack.c.bf16 %v361_v63, %v360_v62  ;;  %v363_v11 = vld [vmem:[#allocation8 + $0x78] sm:$0xff] }
  0x5a   :  { %890 = vmatprep.subr.bf16.mxu0 %v889_v47  ;;  %v917_v12 = vpack.c.bf16 %v363_v11, %v362_v10 }
  0x5c   :  { %714 = vmatmul.mubr.msk.f32.vlgmr.msra.gmra.mrb[0].mxu0 %vm89_vm0, %v1172_v27  ;;  %872 = vmatpush3.bf16.msra.mxu1 %v869_v24 }
  0x5d   :  { %716 = vmatprep.mubr.msk.f32.mxu0 %vm89_vm0, %v1174_v28  ;;  %874 = vmatprep.subr.bf16.mxu1 %v873_v29 }
  0x5e   :  { %892 = vmatpush3.bf16.msra.mxu0 %v889_v47 }
  0x5f   :  { %894 = vmatprep.subr.bf16.mxu0 %v893_v49 }
  0x60   :  { %717 = vmatmul.mubr.msk.f32.gmra.mrb[2].mxu0 %vm89_vm0, %v1180_v32  ;;  %876 = vmatpush3.bf16.msra.mxu1 %v873_v29 }
  0x61   :  { %719 = vmatprep.mubr.msk.f32.mxu0 %vm89_vm0, %v1182_v33  ;;  %878 = vmatprep.subr.bf16.mxu1 %v877_v34 }
  0x62   :  { %896 = vmatpush3.bf16.msra.mxu0 %v893_v49 }
  0x63   :  { %898 = vmatprep.subr.bf16.mxu0 %v897_v52 }
  0x64   :  { %720 = vmatmul.mubr.msk.f32.gmra.mrb[4].mxu0 %vm89_vm0, %v1188_v37  ;;  %880 = vmatpush3.bf16.msra.mxu1 %v877_v34 }
  0x65   :  { %722 = vmatprep.mubr.msk.f32.mxu0 %vm89_vm0, %v1190_v38  ;;  %882 = vmatprep.subr.bf16.mxu1 %v881_v39 }
  0x66   :  { %900 = vmatpush3.bf16.msra.mxu0 %v897_v52 }
  0x67   :  { %902 = vmatprep.subr.bf16.mxu0 %v901_v55 }
  0x68   :  { %723 = vmatmul.mubr.msk.f32.gmra.mrb[6].mxu0 %vm89_vm0, %v1196_v42  ;;  %884 = vmatpush3.bf16.msra.mxu1 %v881_v39 }
  0x69   :  { %886 = vmatprep.subr.bf16.mxu1 %v885_v43 }
  0x6a   :  { %904 = vmatpush3.bf16.msra.mxu0 %v901_v55 }
  0x6b   :  { %906 = vmatprep.subr.bf16.mxu0 %v905_v58 }
  0x6c   :  { %888 = vmatpush3.bf16.msra.mxu1 %v885_v43 }
  0x6e   :  { %908 = vmatpush3.bf16.msra.mxu0 %v905_v58 }
  0x6f   :  { %910 = vmatprep.subr.bf16.mxu0 %v909_v61 }
  0x72   :  { %912 = vmatpush3.bf16.msra.mxu0 %v909_v61 }
  0x73   :  { %914 = vmatprep.subr.bf16.mxu0 %v913_v0 }
  0x76   :  { %916 = vmatpush3.bf16.msra.mxu0 %v913_v0 }
  0x77   :  { %918 = vmatprep.subr.bf16.mxu0 %v917_v12 }
  0x7a   :  { %920 = vmatpush3.bf16.msra.mxu0 %v917_v12 }
 0x12f   :  { %v715_v1 = vpop.f32.mrb[0].mxu0 }
 0x130   :  { %v180_v2 = vpop.f32.mrb[1].mxu0 }
 0x131   :  { %757 = vmatprep.mubr.f32.mxu1 %v180_v2 }
 0x132   :  { %758 = vmatmul.mubr.f32.vlgmr.msra.gmra.mrb[0].mxu1 %v715_v1 }
 0x133   :  { %v718_v3 = vpop.f32.mrb[2].mxu0 }
 0x134   :  { %v190_v4 = vpop.f32.mrb[3].mxu0 }
 0x135   :  { %760 = vmatprep.mubr.f32.mxu1 %v190_v4 }
 0x136   :  { %761 = vmatmul.mubr.f32.gmra.mrb[2].mxu1 %v718_v3 }
 0x137   :  { %v721_v5 = vpop.f32.mrb[4].mxu0 }
 0x138   :  { %v200_v6 = vpop.f32.mrb[5].mxu0 }
 0x139   :  { %763 = vmatprep.mubr.f32.mxu1 %v200_v6 }
 0x13a   :  { %764 = vmatmul.mubr.f32.gmra.mrb[4].mxu1 %v721_v5 }
 0x13b   :  { %v724_v7 = vpop.f32.mrb[6].mxu0 }
 0x13c   :  { %v210_v9 = vpop.f32.mrb[7].mxu0 }
 0x13d   :  { %766 = vmatprep.mubr.f32.mxu1 %v210_v9 }
 0x13e   :  { %767 = vmatmul.mubr.f32.gmra.mrb[6].mxu1 %v724_v7 }
 0x13f   :  { %829 = vmatprep.mubr.msk.f32.mxu1 %vm89_vm0, %v1168_v8 }
 0x205   :  { %v759_v13 = vpop.f32.mrb[0].mxu1 }
 0x206   :  { %v301_v14 = vpop.f32.mrb[1].mxu1  ;;  %v341_v16 = vmax.f32 %v759_v13, 0.0 }
 0x207   :  { %v340_v15 = vmax.f32 %v301_v14, 0.0 }
 0x209   :  { %v762_v17 = vpop.f32.mrb[2].mxu1  ;;  %801 = vmatprep.mubr.f32.mxu0 %v340_v15 }
 0x20a   :  { %v311_v18 = vpop.f32.mrb[3].mxu1  ;;  %802 = vmatmul.mubr.f32.vlgmr.msra.gmra.mrb[8].mxu0 %v341_v16  ;;  %v343_v20 = vmax.f32 %v762_v17, 0.0 }
 0x20b   :  { %v342_v19 = vmax.f32 %v311_v18, 0.0 }
 0x20d   :  { %v765_v21 = vpop.f32.mrb[4].mxu1  ;;  %804 = vmatprep.mubr.f32.mxu0 %v342_v19 }
 0x20e   :  { %v321_v22 = vpop.f32.mrb[5].mxu1  ;;  %805 = vmatmul.mubr.f32.gmra.mrb[10].mxu0 %v343_v20  ;;  %v345_v23 = vmax.f32 %v765_v21, 0.0 }
 0x20f   :  { %v344_v8 = vmax.f32 %v321_v22, 0.0 }
 0x211   :  { %v768_v24 = vpop.f32.mrb[6].mxu1  ;;  %807 = vmatprep.mubr.f32.mxu0 %v344_v8 }
 0x212   :  { %v331_v25 = vpop.f32.mrb[7].mxu1  ;;  %808 = vmatmul.mubr.f32.gmra.mrb[12].mxu0 %v345_v23  ;;  %v347_v29 = vmax.f32 %v768_v24, 0.0 }
 0x213   :  { %v346_v26 = vmax.f32 %v331_v25, 0.0 }
 0x215   :  { %810 = vmatprep.mubr.f32.mxu0 %v346_v26 }
 0x216   :  { %811 = vmatmul.mubr.f32.gmra.mrb[14].mxu0 %v347_v29 }
 0x2dd   :  { %v803_v30 = vpop.f32.mrb[8].mxu0 }
 0x2de   :  { %v430_v31 = vpop.f32.mrb[9].mxu0 }
 0x2df   :  { %v921_v34 = vpack.c.bf16 %v803_v30, %v430_v31 }
 0x2e1   :  { %v806_v35 = vpop.f32.mrb[10].mxu0  ;;  %922 = vmatprep.subr.bf16.mxu1 %v921_v34 }
 0x2e2   :  { %v440_v36 = vpop.f32.mrb[11].mxu0  ;;  %924 = vmatpush3.bf16.msra.mxu1 %v921_v34 }
 0x2e3   :  { %v925_v39 = vpack.c.bf16 %v806_v35, %v440_v36 }
 0x2e5   :  { %v809_v40 = vpop.f32.mrb[12].mxu0  ;;  %926 = vmatprep.subr.bf16.mxu1 %v925_v39 }
 0x2e6   :  { %v450_v41 = vpop.f32.mrb[13].mxu0  ;;  %928 = vmatpush3.bf16.msra.mxu1 %v925_v39 }
 0x2e7   :  { %v929_v43 = vpack.c.bf16 %v809_v40, %v450_v41 }
 0x2e9   :  { %v812_v44 = vpop.f32.mrb[14].mxu0  ;;  %930 = vmatprep.subr.bf16.mxu1 %v929_v43 }
 0x2ea   :  { %v460_v45 = vpop.f32.mrb[15].mxu0  ;;  %932 = vmatpush3.bf16.msra.mxu1 %v929_v43 }
 0x2eb   :  { %v933_v46 = vpack.c.bf16 %v812_v44, %v460_v45 }
 0x2ed   :  { %934 = vmatprep.subr.bf16.mxu1 %v933_v46 }
 0x2ee   :  { %936 = vmatpush3.bf16.msra.mxu1 %v933_v46 }
 0x2f1   :  { %830 = vmatmul.mubr.msk.f32.vlgmr.msra.gmra.mrb[8].mxu1 %vm89_vm0, %v1172_v27 }
 0x2f2   :  { %832 = vmatprep.mubr.msk.f32.mxu1 %vm89_vm0, %v1174_v28 }
 0x2f5   :  { %833 = vmatmul.mubr.msk.f32.gmra.mrb[10].mxu1 %vm89_vm0, %v1180_v32 }
 0x2f6   :  { %835 = vmatprep.mubr.msk.f32.mxu1 %vm89_vm0, %v1182_v33 }
 0x2f9   :  { %836 = vmatmul.mubr.msk.f32.gmra.mrb[12].mxu1 %vm89_vm0, %v1188_v37 }
 0x2fa   :  { %838 = vmatprep.mubr.msk.f32.mxu1 %vm89_vm0, %v1190_v38 }
 0x2fd   :  { %839 = vmatmul.mubr.msk.f32.gmra.mrb[14].mxu1 %vm89_vm0, %v1196_v42 }
 0x3c4   :  { %v831_v47 = vpop.f32.mrb[8].mxu1 }
 0x3c5   :  { %575 = vst [vmem:[#allocation10 + $0x8] sm:$0xff] %v831_v47  ;;  %v535_v27 = vpop.f32.mrb[9].mxu1 }
 0x3c6   :  { %574 = vst [vmem:[#allocation10] sm:$0xff] %v535_v27 }
 0x3c8   :  { %v834_v28 = vpop.f32.mrb[10].mxu1 }
 0x3c9   :  { %577 = vst [vmem:[#allocation10 + $0x18] sm:$0xff] %v834_v28  ;;  %v545_v48 = vpop.f32.mrb[11].mxu1 }
 0x3ca   :  { %576 = vst [vmem:[#allocation10 + $0x10] sm:$0xff] %v545_v48 }
 0x3cc   :  { %v837_v32 = vpop.f32.mrb[12].mxu1 }
 0x3cd   :  { %579 = vst [vmem:[#allocation10 + $0x28] sm:$0xff] %v837_v32  ;;  %v555_v33 = vpop.f32.mrb[13].mxu1 }
 0x3ce   :  { %578 = vst [vmem:[#allocation10 + $0x20] sm:$0xff] %v555_v33 }
 0x3d0   :  { %v840_v37 = vpop.f32.mrb[14].mxu1 }
 0x3d1   :  { %581 = vst [vmem:[#allocation10 + $0x38] sm:$0xff] %v840_v37  ;;  %v565_v38 = vpop.f32.mrb[15].mxu1 }
 0x3d2   :  { %580 = vst [vmem:[#allocation10 + $0x30] sm:$0xff] %v565_v38 }
 0x3d3   :  { %1043 = shalt.err (!%p1040_p8)
}
 0x3d4   :  { %s1044_s15 = scalar_lea.hbm %s1235_s4, 1024 }
 0x3d5   :  { %p1045_p9 = scmp.ne.s32.totalorder %s1235_s4, %s1044_s15  ;;  %p1048_p10 = scmp.lt.u32.totalorder %s1044_s15, %s1235_s4 }
 0x3d7   :  { %p1050_p11 = pnand %p1048_p10, %p1045_p9 }
 0x3d9   :  { %1053 = shalt.err (!%p1050_p11)
}
 0x3da   :  { %593 = dma.vmem_to_hbm [thread:$0]  %s588_s12, 1024, %s1235_s4, [#allocation4], %s1064_s27, %s1064_s27, %s1065_s28  }
 0x3db   :  { %1060 = dma.done.wait [#allocation4], 1024  }
 0x3dc   :  { %1061 = vsyncadd [#allocation4], 4294966272 }
 0x3dd   :  { %597 = vsyncpa [#allocation3], 1 }
 0x3de   :  { %598 = vsyncpa [#allocation6], 1 }
 0x3df   :  { %599 = vsyncpa [#allocation9], 1 }
 0x3e0   :  { %600 = vsyncpa [#allocation4], 1 }

</bundles_post_ra>
